<compile_context>
chip_gen: v5e
topology: v5e:2x2
jax: 0.10.0
libtpu: 0.0.40
codegen_flags: <defaults>
</compile_context>

<pallas_src>
import jax
import jax.numpy as jnp
import numpy as np
from jax.experimental import pallas as pl
from jax.experimental.pallas import tpu as pltpu


def _round_up(x, m):
    return (x + m - 1) // m * m


def _vmem_cap_bytes():
    """Generation-aware VMEM budget: ~80% of physical (64 MiB fallback)."""
    try:
        cap = int(pltpu.get_tpu_info().vmem_capacity_bytes)
    except Exception:  # not on TPU / older jax: be conservative (v7x = 64 MiB)
        cap = 64 * 1024 * 1024
    return int(cap * 0.8)


def _swiglu_kernel(x_ref, w12_ref, b12_ref, w3_ref, b3_ref, o_ref, acc_ref):
    h = pl.program_id(2)
    nh = pl.num_programs(2)

    @pl.when(h == 0)
    def _init():
        acc_ref[...] = jnp.zeros_like(acc_ref)

    x = x_ref[...]
    # Fused gate|value projection: ONE (tm, D_in) x (D_in, 2*th) MXU matmul,
    # f32 accumulation regardless of operand dtype; biases added in f32.
    gv = jnp.dot(x, w12_ref[...], preferred_element_type=jnp.float32) + b12_ref[...]
    th = w3_ref.shape[0]
    x1 = gv[:, :th]          # gate  (W1 columns for this hidden tile)
    x2 = gv[:, th:]          # value (W2 columns for this hidden tile)
    # SiLU in f32 (sigmoid goes to the EUP slot, mul on VPU).
    hidden = (x1 * jax.nn.sigmoid(x1)) * x2
    # Partial W3 contribution for this hidden tile, accumulated in f32 VMEM.
    acc_ref[...] += jnp.dot(hidden.astype(w3_ref.dtype), w3_ref[...],
                            preferred_element_type=jnp.float32)

    @pl.when(h == nh - 1)
    def _finalize():
        o_ref[...] = (acc_ref[...] + b3_ref[...]).astype(o_ref.dtype)


def pack_reverse_embedding_params(params_list, *, th=1024,
                                  compute_dtype=jnp.bfloat16):
    """One-time packing of per-stream MLP params into MXU/DMA-friendly slabs.

    params_list[s] = (w1, b1, w2, b2, w3, b3) with w1,w2: [D_in, H],
    w3: [H, D_out_s], biases [1, out_dim]. All streams share D_in and H.
    """
    f32 = jnp.float32
    cd = compute_dtype
    n_streams = len(params_list)

    d_in = params_list[0][0].shape[0]
    hidden = params_list[0][0].shape[1]
    out_dims = tuple(int(p[4].shape[1]) for p in params_list)
    for (w1, _b1, w2, _b2, w3, _b3) in params_list:
        assert w1.shape == (d_in, hidden) and w2.shape == (d_in, hidden)
        assert w3.shape[0] == hidden

    # Lane-dense padding (multiples of 128 on all last dims); hidden tile th.
    d_in_p = _round_up(d_in, 128)
    d_out_p = _round_up(max(out_dims), 128)
    th = _round_up(min(th, _round_up(hidden, 128)), 128)
    h_p = _round_up(hidden, th)
    n_h = h_p // th

    w12_slabs, b12_slabs, w3_slabs, b3_slabs = [], [], [], []
    for (w1, b1, w2, b2, w3, b3) in params_list:
        w1p = jnp.pad(w1.astype(cd), ((0, d_in_p - d_in), (0, h_p - hidden)))
        w2p = jnp.pad(w2.astype(cd), ((0, d_in_p - d_in), (0, h_p - hidden)))
        # W1|W2 packed per hidden tile -> [n_h, d_in_p, 2*th]
        w12_slabs.append(jnp.concatenate(
            [w1p.reshape(d_in_p, n_h, th).transpose(1, 0, 2),
             w2p.reshape(d_in_p, n_h, th).transpose(1, 0, 2)], axis=-1))
        b1p = jnp.pad(b1.astype(f32), ((0, 0), (0, h_p - hidden)))
        b2p = jnp.pad(b2.astype(f32), ((0, 0), (0, h_p - hidden)))
        b12_slabs.append(jnp.concatenate(
            [b1p.reshape(1, n_h, th).transpose(1, 0, 2),
             b2p.reshape(1, n_h, th).transpose(1, 0, 2)], axis=-1))
        d_out = w3.shape[1]
        w3_slabs.append(jnp.pad(w3.astype(cd),
                                ((0, h_p - hidden), (0, d_out_p - d_out))))
        b3_slabs.append(jnp.pad(b3.astype(f32), ((0, 0), (0, d_out_p - d_out))))

    return {
        "w12": jnp.concatenate(w12_slabs, axis=0),   # [S*n_h, d_in_p, 2*th]
        "b12": jnp.concatenate(b12_slabs, axis=0),   # [S*n_h, 1, 2*th]  (f32)
        "w3": jnp.stack(w3_slabs, axis=0),           # [S, h_p, d_out_p]
        "b3": jnp.stack(b3_slabs, axis=0),           # [S, 1, d_out_p]   (f32)
        "meta": dict(n_streams=n_streams, d_in=d_in, hidden=hidden,
                     out_dims=out_dims, d_in_p=d_in_p, d_out_p=d_out_p,
                     th=th, n_h=n_h, compute_dtype=cd),
    }


def reverse_embedding_forward(tensors, packed, *, tm=1024):
    """tensors: [B, n_streams, ..., dim] -> list of [B, ..., input_dims[i]].

    Mirrors ReverseEmbedding.forward: swapaxes(0, 1), one MLP per stream,
    all streams fused into a single pallas_call.
    `packed` is the output of pack_reverse_embedding_params (a raw params_list
    is also accepted and packed on the fly, but pre-packing is preferred).
    """
    if isinstance(packed, (list, tuple)):
        packed = pack_reverse_embedding_params(packed)

    meta = packed["meta"]
    s_n, d_in, hidden = meta["n_streams"], meta["d_in"], meta["hidden"]
    d_in_p, d_out_p = meta["d_in_p"], meta["d_out_p"]
    th, n_h = meta["th"], meta["n_h"]
    cd = meta["compute_dtype"]
    out_dims = meta["out_dims"]
    out_dtype = tensors.dtype

    uvs = jnp.swapaxes(tensors, 0, 1)                  # [S, B, ..., D_in]
    assert uvs.shape[0] == s_n and uvs.shape[-1] == d_in
    lead = uvs.shape[1:-1]
    n = int(np.prod(lead))
    x = uvs.reshape(s_n, n, d_in)

    # Row tile: multiple of 8; when only one stream exists, keep >= 2 row tiles
    # so the "parallel" axes still shard across both v7x TensorCores.
    tm = _round_up(min(tm, _round_up(n, 8)), 8)
    if s_n == 1 and n >= 16:
        tm = min(tm, _round_up((n + 1) // 2, 8))

    csize = np.dtype(cd).itemsize
    osize = np.dtype(out_dtype).itemsize
    cap = _vmem_cap_bytes()

    def _est(tm_):
        per = (tm_ * d_in_p * csize          # x tile
               + d_in_p * 2 * th * csize     # fused W1|W2 tile
               + 2 * th * 4                  # fused b1|b2 (f32)
               + th * d_out_p * csize        # W3 row tile
               + d_out_p * 4                 # b3 (f32)
               + tm_ * d_out_p * osize)      # output tile
        return 2 * per + tm_ * d_out_p * 4   # double-buffered + f32 accumulator

    # Shrink the row tile until the double-buffered blocks fit the VMEM budget.
    while _est(tm) > cap and tm > 8:
        tm = max(8, _round_up(tm // 2, 8))

    n_p = _round_up(n, tm)
    n_rows = n_p // tm
    grid = (s_n, n_rows, n_h)

    xp = jnp.pad(x.astype(cd), ((0, 0), (0, n_p - n), (0, d_in_p - d_in)))

    vmem_limit = int(min(max(_est(tm) + _est(tm) // 2, 32 * 1024 * 1024), cap))

    w12, b12, w3, b3 = packed["w12"], packed["b12"], packed["w3"], packed["b3"]

    cost = pl.CostEstimate(
        flops=2 * s_n * n * (2 * d_in * hidden + hidden * max(out_dims)),
        transcendentals=s_n * n * hidden,
        bytes_accessed=int(xp.size * csize
                           + (w12.size * csize + b12.size * 4
                              + w3.size * csize + b3.size * 4) * n_rows
                           + s_n * n_p * d_out_p * osize),
    )

    # NOTE: if weight DMA is still exposed at these tile sizes, the W12 spec can
    # take pipeline_mode=pl.Buffered(3) (verify the VMEM budget still fits).
    out_p = pl.pallas_call(
        _swiglu_kernel,
        out_shape=jax.ShapeDtypeStruct((s_n, n_p, d_out_p), out_dtype),
        grid_spec=pltpu.PrefetchScalarGridSpec(
            num_scalar_prefetch=0,
            grid=grid,
            in_specs=[
                pl.BlockSpec((None, tm, d_in_p), lambda s, i, h: (s, i, 0)),
                pl.BlockSpec((None, d_in_p, 2 * th),
                             lambda s, i, h: (s * n_h + h, 0, 0)),
                pl.BlockSpec((None, 1, 2 * th),
                             lambda s, i, h: (s * n_h + h, 0, 0)),
                pl.BlockSpec((None, th, d_out_p), lambda s, i, h: (s, h, 0)),
                pl.BlockSpec((None, 1, d_out_p), lambda s, i, h: (s, 0, 0)),
            ],
            out_specs=pl.BlockSpec((None, tm, d_out_p), lambda s, i, h: (s, i, 0)),
            scratch_shapes=[pltpu.VMEM((tm, d_out_p), jnp.float32)],
        ),
        compiler_params=pltpu.CompilerParams(
            dimension_semantics=("parallel", "parallel", "arbitrary"),
            vmem_limit_bytes=vmem_limit,
        ),
        cost_estimate=cost,
    )(xp, w12, b12, w3, b3)

    outs = []
    for s_idx, d_out in enumerate(out_dims):
        outs.append(out_p[s_idx, :n, :d_out].reshape(*lead, d_out))
    return outs


# ---------------------------- params / reference ----------------------------

def _init_linear(kw, kb, fan_in, fan_out, dtype):
    bound = 1.0 / np.sqrt(fan_in)
    w = jax.random.uniform(kw, (fan_in, fan_out), dtype, -bound, bound)
    b = jax.random.uniform(kb, (1, fan_out), dtype, -bound, bound)
    return w, b


def init_mlp_params(key, input_dim, hidden_dim, output_dim, dtype=jnp.float32):
    k1, k2, k3, k4, k5, k6 = jax.random.split(key, 6)
    w1, b1 = _init_linear(k1, k2, input_dim, hidden_dim, dtype)
    w2, b2 = _init_linear(k3, k4, input_dim, hidden_dim, dtype)
    w3, b3 = _init_linear(k5, k6, hidden_dim, output_dim, dtype)
    return (w1, b1, w2, b2, w3, b3)


def init_reverse_embedding_params(key, input_dims, dim=2048, dtype=jnp.float32):
    keys = jax.random.split(key, len(input_dims))
    return [init_mlp_params(k, dim, dim * 2, d_out, dtype)
            for k, d_out in zip(keys, input_dims)]


def _mlp_ref(x, params):
    w1, b1, w2, b2, w3, b3 = params
    x1 = x @ w1 + b1[0]
    x2 = x @ w2 + b2[0]
    return (x1 * jax.nn.sigmoid(x1) * x2) @ w3 + b3[0]


if __name__ == "__main__":
    key = jax.random.PRNGKey(0)
    batch, seq = 2, 8
    dim = 256                     # model dim (hidden = 2*dim, per ReverseEmbedding)
    input_dims = (96, 128)        # per-stream output dims (96 exercises lane padding)

    kp, kx = jax.random.split(key)
    params_list = init_reverse_embedding_params(kp, input_dims, dim=dim)
    tensors = jax.random.normal(kx, (batch, len(input_dims), seq, dim), jnp.float32)
    uvs = jnp.swapaxes(tensors, 0, 1)

    # f32 operands + small tiles so the (stream, rows, hidden) grid has multiple
    # steps even at toy shapes (exercises accumulator init/finalize + pipelining).
    packed_f32 = pack_reverse_embedding_params(params_list, th=256,
                                               compute_dtype=jnp.float32)
    outs = reverse_embedding_forward(tensors, packed_f32, tm=8)
    outs = jax.block_until_ready(outs)
    for s, d_out in enumerate(input_dims):
        assert outs[s].shape == (batch, seq, d_out)
        ref = _mlp_ref(uvs[s], params_list[s])
        assert jnp.allclose(outs[s], ref, atol=1e-2, rtol=1e-2), f"stream {s} f32 mismatch"

    # Default fast path: pre-packed bf16 MXU operands, f32 accumulation,
    # default (large) tiles — looser tolerance.
    packed_bf16 = pack_reverse_embedding_params(params_list)
    outs_bf16 = reverse_embedding_forward(tensors, packed_bf16)
    outs_bf16 = jax.block_until_ready(outs_bf16)
    for s, d_out in enumerate(input_dims):
        assert outs_bf16[s].shape == (batch, seq, d_out)
        ref = _mlp_ref(uvs[s], params_list[s])
        assert jnp.allclose(outs_bf16[s].astype(jnp.float32), ref,
                            atol=1e-1, rtol=1e-1), f"stream {s} bf16 mismatch"

    print("KERNEL_OK")
</pallas_src>

<mosaic_0001>
module attributes {stable_mosaic.version = 11 : i64} {
  func.func @_swiglu_kernel(%arg0: i32, %arg1: i32, %arg2: i32, %arg3: memref<1x8x256xf32, #tpu.memory_space<vmem>>, %arg4: memref<1x256x512xf32, #tpu.memory_space<vmem>>, %arg5: memref<1x1x512xf32, #tpu.memory_space<vmem>>, %arg6: memref<1x256x128xf32, #tpu.memory_space<vmem>>, %arg7: memref<1x1x128xf32, #tpu.memory_space<vmem>>, %arg8: memref<1x8x128xf32, #tpu.memory_space<vmem>>, %arg9: memref<8x128xf32, #tpu.memory_space<vmem>>) attributes {dimension_semantics = [#tpu.dimension_semantics<parallel>, #tpu.dimension_semantics<parallel>, #tpu.dimension_semantics<arbitrary>], iteration_bounds = array<i64: 2, 2, 2>, scalar_prefetch = 0 : i64, scratch_operands = 1 : i64, tpu.core_type = #tpu.core_type<tc>, window_params = [{transform_indices = @transform_0, window_bounds = array<i64: 1, 8, 256>}, {transform_indices = @transform_1, window_bounds = array<i64: 1, 256, 512>}, {transform_indices = @transform_2, window_bounds = array<i64: 1, 1, 512>}, {transform_indices = @transform_3, window_bounds = array<i64: 1, 256, 128>}, {transform_indices = @transform_4, window_bounds = array<i64: 1, 1, 128>}, {transform_indices = @transform_5, window_bounds = array<i64: 1, 8, 128>}]} {
    %c0_i32 = arith.constant 0 : i32
    %0 = arith.cmpi eq, %arg2, %c0_i32 : i32
    %1 = arith.extui %0 : i1 to i32
    %c0_i32_0 = arith.constant 0 : i32
    %2 = arith.cmpi ne, %1, %c0_i32_0 : i32
    scf.if %2 {
      %cst_19 = arith.constant 0.000000e+00 : f32
      %30 = vector.broadcast %cst_19 : f32 to vector<8x128xf32>
      %c0_20 = arith.constant 0 : index
      %c0_21 = arith.constant 0 : index
      %31 = vector.load %arg9[%c0_20, %c0_21] : memref<8x128xf32, #tpu.memory_space<vmem>>, vector<8x128xf32>
      tpu.vector_store %arg9[%c0_20, %c0_21], %30 {strides = array<i32>} : memref<8x128xf32, #tpu.memory_space<vmem>>, vector<8x128xf32>,
    } else {
    }
    %c0 = arith.constant 0 : index
    %c0_1 = arith.constant 0 : index
    %c0_2 = arith.constant 0 : index
    %3 = vector.load %arg3[%c0, %c0_1, %c0_2] : memref<1x8x256xf32, #tpu.memory_space<vmem>>, vector<1x8x256xf32>
    %4 = vector.shape_cast %3 : vector<1x8x256xf32> to vector<8x256xf32>
    %c0_3 = arith.constant 0 : index
    %c0_4 = arith.constant 0 : index
    %c0_5 = arith.constant 0 : index
    %5 = vector.load %arg4[%c0_3, %c0_4, %c0_5] : memref<1x256x512xf32, #tpu.memory_space<vmem>>, vector<1x256x512xf32>
    %6 = vector.shape_cast %5 : vector<1x256x512xf32> to vector<256x512xf32>
    %cst = arith.constant dense<0.000000e+00> : vector<8x512xf32>
    %7 = tpu.matmul %4, %6, %cst {dimension_numbers = #tpu.dot_dimension_numbers<[1], [0], [0], [1], [0, 0, 1, 1], [], []>} : vector<8x256xf32>, vector<256x512xf32>, vector<8x512xf32> -> vector<8x512xf32>
    %c0_6 = arith.constant 0 : index
    %c0_7 = arith.constant 0 : index
    %c0_8 = arith.constant 0 : index
    %8 = vector.load %arg5[%c0_6, %c0_7, %c0_8] : memref<1x1x512xf32, #tpu.memory_space<vmem>>, vector<1x1x512xf32>
    %9 = vector.shape_cast %8 : vector<1x1x512xf32> to vector<1x512xf32>
    %10 = vector.broadcast %9 : vector<1x512xf32> to vector<8x512xf32>
    %11 = arith.addf %7, %10 : vector<8x512xf32>
    %12 = vector.extract_strided_slice %11 {offsets = [0, 0], sizes = [8, 256], strides = [1, 1]} : vector<8x512xf32> to vector<8x256xf32>
    %13 = vector.extract_strided_slice %11 {offsets = [0, 256], sizes = [8, 256], strides = [1, 1]} : vector<8x512xf32> to vector<8x256xf32>
    %14 = arith.negf %12 : vector<8x256xf32>
    %15 = math.exp %14 : vector<8x256xf32>
    %cst_9 = arith.constant 1.000000e+00 : f32
    %16 = vector.broadcast %cst_9 : f32 to vector<8x256xf32>
    %17 = arith.addf %16, %15 : vector<8x256xf32>
    %18 = arith.divf %16, %17 : vector<8x256xf32>
    %19 = arith.mulf %12, %18 : vector<8x256xf32>
    %20 = arith.mulf %19, %13 : vector<8x256xf32>
    %c0_10 = arith.constant 0 : index
    %c0_11 = arith.constant 0 : index
    %21 = vector.load %arg9[%c0_10, %c0_11] : memref<8x128xf32, #tpu.memory_space<vmem>>, vector<8x128xf32>
    %c0_12 = arith.constant 0 : index
    %c0_13 = arith.constant 0 : index
    %c0_14 = arith.constant 0 : index
    %22 = vector.load %arg6[%c0_12, %c0_13, %c0_14] : memref<1x256x128xf32, #tpu.memory_space<vmem>>, vector<1x256x128xf32>
    %23 = vector.shape_cast %22 : vector<1x256x128xf32> to vector<256x128xf32>
    %cst_15 = arith.constant dense<0.000000e+00> : vector<8x128xf32>
    %24 = tpu.matmul %20, %23, %cst_15 {dimension_numbers = #tpu.dot_dimension_numbers<[1], [0], [0], [1], [0, 0, 1, 1], [], []>} : vector<8x256xf32>, vector<256x128xf32>, vector<8x128xf32> -> vector<8x128xf32>
    %25 = arith.addf %21, %24 : vector<8x128xf32>
    %c0_16 = arith.constant 0 : index
    %c0_17 = arith.constant 0 : index
    %26 = vector.load %arg9[%c0_16, %c0_17] : memref<8x128xf32, #tpu.memory_space<vmem>>, vector<8x128xf32>
    tpu.vector_store %arg9[%c0_16, %c0_17], %25 {strides = array<i32>} : memref<8x128xf32, #tpu.memory_space<vmem>>, vector<8x128xf32>,
    %c1_i32 = arith.constant 1 : i32
    %27 = arith.cmpi eq, %arg2, %c1_i32 : i32
    %28 = arith.extui %27 : i1 to i32
    %c0_i32_18 = arith.constant 0 : i32
    %29 = arith.cmpi ne, %28, %c0_i32_18 : i32
    scf.if %29 {
      %c0_19 = arith.constant 0 : index
      %c0_20 = arith.constant 0 : index
      %30 = vector.load %arg9[%c0_19, %c0_20] : memref<8x128xf32, #tpu.memory_space<vmem>>, vector<8x128xf32>
      %c0_21 = arith.constant 0 : index
      %c0_22 = arith.constant 0 : index
      %c0_23 = arith.constant 0 : index
      %31 = vector.load %arg7[%c0_21, %c0_22, %c0_23] : memref<1x1x128xf32, #tpu.memory_space<vmem>>, vector<1x1x128xf32>
      %32 = vector.shape_cast %31 : vector<1x1x128xf32> to vector<1x128xf32>
      %33 = vector.broadcast %32 : vector<1x128xf32> to vector<8x128xf32>
      %34 = arith.addf %30, %33 : vector<8x128xf32>
      %c0_24 = arith.constant 0 : index
      %c0_25 = arith.constant 0 : index
      %c0_26 = arith.constant 0 : index
      %35 = vector.load %arg8[%c0_24, %c0_25, %c0_26] : memref<1x8x128xf32, #tpu.memory_space<vmem>>, vector<1x8x128xf32>
      %36 = vector.shape_cast %35 : vector<1x8x128xf32> to vector<8x128xf32>
      %37 = vector.shape_cast %34 : vector<8x128xf32> to vector<1x8x128xf32>
      tpu.vector_store %arg8[%c0_24, %c0_25, %c0_26], %37 {strides = array<i32>} : memref<1x8x128xf32, #tpu.memory_space<vmem>>, vector<1x8x128xf32>,
    } else {
    }
    return
  }
  func.func @transform_0(%arg0: i32, %arg1: i32, %arg2: i32) -> (i32, i32, i32) {
    %c0_i32 = arith.constant 0 : i32
    %c0_i32_0 = arith.constant 0 : i32
    return %arg0, %arg1, %c0_i32 : i32, i32, i32
  }
  func.func @transform_1(%arg0: i32, %arg1: i32, %arg2: i32) -> (i32, i32, i32) {
    %c2_i32 = arith.constant 2 : i32
    %0 = arith.muli %arg0, %c2_i32 : i32
    %1 = arith.addi %0, %arg2 : i32
    %c0_i32 = arith.constant 0 : i32
    %c0_i32_0 = arith.constant 0 : i32
    %c0_i32_1 = arith.constant 0 : i32
    return %1, %c0_i32, %c0_i32_0 : i32, i32, i32
  }
  func.func @transform_2(%arg0: i32, %arg1: i32, %arg2: i32) -> (i32, i32, i32) {
    %c2_i32 = arith.constant 2 : i32
    %0 = arith.muli %arg0, %c2_i32 : i32
    %1 = arith.addi %0, %arg2 : i32
    %c0_i32 = arith.constant 0 : i32
    %c0_i32_0 = arith.constant 0 : i32
    %c0_i32_1 = arith.constant 0 : i32
    return %1, %c0_i32, %c0_i32_0 : i32, i32, i32
  }
  func.func @transform_3(%arg0: i32, %arg1: i32, %arg2: i32) -> (i32, i32, i32) {
    %c0_i32 = arith.constant 0 : i32
    %c0_i32_0 = arith.constant 0 : i32
    return %arg0, %arg2, %c0_i32 : i32, i32, i32
  }
  func.func @transform_4(%arg0: i32, %arg1: i32, %arg2: i32) -> (i32, i32, i32) {
    %c0_i32 = arith.constant 0 : i32
    %c0_i32_0 = arith.constant 0 : i32
    %c0_i32_1 = arith.constant 0 : i32
    return %arg0, %c0_i32, %c0_i32_0 : i32, i32, i32
  }
  func.func @transform_5(%arg0: i32, %arg1: i32, %arg2: i32) -> (i32, i32, i32) {
    %c0_i32 = arith.constant 0 : i32
    %c0_i32_0 = arith.constant 0 : i32
    return %arg0, %arg1, %c0_i32 : i32, i32, i32
  }
}

</mosaic_0001>

<bundles_post_ra>
// kernel: tpu_custom_call.1
= control target key start
LH: loop header
LB: loop body
LE: loop exit
PB: predicated region body
PF: predicated region fallthrough
CT: control target
= control target key end

     0   :  { %s2313_s0 = inlined_call_operand.hbm [shape: f32[2,16,256], index: 0, kind: input, shape index: {}]   ;;  %s2314_s1 = inlined_call_operand.hbm [shape: f32[4,256,512], index: 1, kind: input, shape index: {}]   ;;  %s2315_s2 = inlined_call_operand.hbm [shape: f32[4,1,512], index: 2, kind: input, shape index: {}]   ;;  %s2316_s3 = inlined_call_operand.hbm [shape: f32[2,512,128], index: 3, kind: input, shape index: {}]   ;;  %s2317_s4 = inlined_call_operand.hbm [shape: f32[2,1,128], index: 4, kind: input, shape index: {}]   ;;  %s2318_s5 = inlined_call_operand.hbm [shape: f32[2,16,128], index: 5, kind: output, shape index: {}]  }
   0x1   :  { %2343 = sst [smem:[#allocation38_spill]] %s2313_s0 }
   0x2   :  { %2344 = sst [smem:[#allocation39_spill]] %s2314_s1 }
   0x3   :  { %2345 = sst [smem:[#allocation40_spill]] %s2315_s2 }
   0x4   :  { %2346 = sst [smem:[#allocation41_spill]] %s2316_s3 }
   0x5   :  { %2347 = sst [smem:[#allocation42_spill]] %s2317_s4 }
   0x6   :  { %2348 = sst [smem:[#allocation43_spill]] %s2318_s5 }
   0x7   :  { %10 = vsyncpa [#allocation4], 0 }
   0x8   :  { %12 = vsyncpa [#allocation4 + $0x1], 0 }
   0x9   :  { %13 = vsyncpa [#allocation7], 0 }
   0xa   :  { %15 = vsyncpa [#allocation7 + $0x1], 0 }
   0xb   :  { %16 = vsyncpa [#allocation10], 0 }
   0xc   :  { %18 = vsyncpa [#allocation10 + $0x1], 0 }
   0xd   :  { %19 = vsyncpa [#allocation5], 0 }
   0xe   :  { %21 = vsyncpa [#allocation5 + $0x1], 0  ;;  %s1697_s18 = smov 0   ;;  %s1699_s19 = smov 0  }
   0xf   :  { %s1701_s20 = smov 0   ;;  %s1703_s21 = smov 0  }
  0x10   :  { %s1705_s22 = smov 0   ;;  %s1707_s23 = smov 0  }
  0x11   :  { %s1709_s24 = smov 0   ;;  %s1711_s25 = smov 0  }
  0x12   :  { %s1713_s26 = smov 0   ;;  %s1715_s27 = smov 0  }
  0x13   :  { %s1717_s28 = smov 0   ;;  %s1719_s29 = smov 0  }
  0x14   :  { %s1721_s30 = smov 0   ;;  %s1723_s6 = smov 0  }
  0x15   :  { %s1725_s7 = smov 0   ;;  %s1727_s8 = smov 0  }
  0x16   :  { %s1729_s9 = smov 0   ;;  %s1731_s10 = smov 0  }
  0x17   :  { %s1733_s11 = smov 0  }
  0x18 LB: > { %2349 = sst [smem:[#allocation18_spill]] %s1588_s18  ;;  %p2323_p0 = scmp.eq.s32.totalorder %s1660_s11, 0  ;;  %s1660_s11 = sphi %s1733_s11, %s27_s11   ;;  %s1656_s10 = sphi %s1731_s10, %s2431_s10   ;;  %s1652_s9 = sphi %s1729_s9, %s2418_s9   ;;  %s1648_s8 = sphi %s1727_s8, %s2430_s8   ;;  %s1644_s7 = sphi %s1725_s7, %s2429_s7   ;;  %s1640_s6 = sphi %s1723_s6, %s2415_s6   ;;  %s1636_s30 = sphi %s1721_s30, %s2414_s30   ;;  %s1632_s29 = sphi %s1719_s29, %s2413_s29   ;;  %s1628_s28 = sphi %s1717_s28, %s2428_s28   ;;  %s1624_s27 = sphi %s1715_s27, %s2427_s27   ;;  %s1620_s26 = sphi %s1713_s26, %s2426_s26   ;;  %s1616_s25 = sphi %s1711_s25, %s2425_s25   ;;  %s1612_s24 = sphi %s1709_s24, %s2411_s24   ;;  %s1608_s23 = sphi %s1707_s23, %s2424_s23   ;;  %s1604_s22 = sphi %s1705_s22, %s2423_s22   ;;  %s1600_s21 = sphi %s1703_s21, %s2410_s21   ;;  %s1596_s20 = sphi %s1701_s20, %s2421_s20   ;;  %s1592_s19 = sphi %s1699_s19, %s2419_s19   ;;  %s1588_s18 = sphi %s1697_s18, %s2417_s18  }
  0x19   : > { %2350 = sst [smem:[#allocation19_spill]] %s1604_s22  ;;  %s1075_s12 = sshll.u32 %s1656_s10, 1 }
  0x1a   : > { %2351 = sst [smem:[#allocation20_spill]] %s1616_s25  ;;  %s1795_s13 = sadd.s32 %s1648_s8, %s1075_s12 }
  0x1b   : > { %2352 = sst [smem:[#allocation21_spill]] %s1632_s29  ;;  %p92_p1 = scmp.ne.s32.totalorder %s1620_s26, %s1616_s25 }
  0x1c   : > { %2353 = sst [smem:[#allocation22_spill]] %s1636_s30  ;;  %p98_p2 = scmp.ne.s32.totalorder %s1616_s25, %s1612_s24 }
  0x1d   : > { %2354 = sst [smem:[#allocation23_spill]] %s1640_s6  ;;  %p2324_p3 = scmp.lt.s32.totalorder %s1660_s11, 8 }
  0x1e   : > { %2355 = sst [smem:[#allocation24_spill]] %s1644_s7  ;;  %p94_p4 = por %p92_p1, %p2323_p0 }
  0x1f   : > { %2356 = sst [smem:[#allocation25_spill]] %s1648_s8  ;;  %s2321_s15 = sand.u32 1, %s1660_s11  }
  0x20   : > { %2357 = sst [smem:[#allocation26_spill]] %s1652_s9  ;;  %s2320_s16 = sand.u32 1, %s1620_s26  }
  0x21   : > { %s1085_s17 = sshll.u32 %s2320_s16, 10  ;;  %s1111_s5 = sshll.u32 %s1795_s13, 10 }
  0x22   : > { %s2358_s1 = sld [smem:[#allocation39_spill]]  ;;  %s260_s30 = scalar_lea.vmem [#allocation6], %s1085_s17 }
  0x23   : > { %s270_s4 = sshll.u32 %s260_s30, 4  ;;  %p1815_p5 = pnand %p2324_p3, %p94_p4  ;;  %s271_s4 = int_to_ptr.vmem [resolvable:$true] %s270_s4 }
  0x24   : > { %p1096_p6 = scmp.ge.s32.totalorder %s1660_s11, 1  ;;  %p340_p7 = scmp.lt.s32.totalorder %s1660_s11, 9 }
  0x25   : > { %s1662_s6 = smov 512   ;;  %p150_p9 = scmp.ne.s32.totalorder %s1608_s23, %s1604_s22 }
  0x26   : > { %p1828_p8 = pnand %p1096_p6, %p340_p7  ;;  %p156_p10 = scmp.ne.s32.totalorder %s1604_s22, %s1600_s21 }
  0x27   : > { %s303_s12 = sand.u32 1, %s1608_s23   ;;  %p152_p11 = por %p150_p9, %p2323_p0 }
  0x28   : > { %s267_s14 = scalar_lea.hbm %s2358_s1, %s1111_s5  ;;  %s1823_s5 = scalar_lea.sflag [#allocation7], %s2321_s15 }
  0x29   : > { %s268_s7 = sshll.u32 %s267_s14, 4  ;;  %s1663_s14 = smov 32   ;;  %s269_s7 = int_to_ptr.hbm [resolvable:$true] %s268_s7 }
  0x2a   : > { %1130 = dma.hbm_to_vmem [thread:$0]  (!%p1815_p5), %s269_s7, 16384, %s271_s4, %s1823_s5, %s1662_s6, %s1662_s6, %s1663_s14  }
  0x2b   : > { %s2360_s30 = scalar_select %p1828_p8, 1, 0 }
  0x2c   : > { %s1092_s1 = sshll.u32 %s303_s12, 8  ;;  %s1093_s15 = sshll.u32 %s1648_s8, 5 }
  0x2d   : > { %2361 = sst [smem:[#allocation27_spill]] %s2360_s30  ;;  %s1094_s2 = sshll.u32 %s1656_s10, 6 }
  0x2e   : > { %s305_s18 = scalar_lea.vmem [#allocation9], %s1092_s1  ;;  %s310_s7 = sadd.s32 %s1094_s2, %s1093_s15 }
  0x2f   : > { %s315_s4 = sshll.u32 %s305_s18, 4  ;;  %s1095_s6 = sshll.u32 %s310_s7, 3  ;;  %s316_s4 = int_to_ptr.vmem [resolvable:$true] %s315_s4 }
  0x30   : > { %p1134_p12 = pnand %p2324_p3, %p152_p11  ;;  %s2362_s3 = sld [smem:[#allocation41_spill]] }
  0x31   : > { %s2363_s1 = sand.u32 1, %s1660_s11   ;;  %s1664_s18 = smov 128  }
  0x32   : > { %s1849_s2 = scalar_lea.sflag [#allocation10], %s2363_s1  ;;  %s1665_s15 = smov 8  }
  0x33   : > { %2364 = sst [smem:[#allocation28_spill]] %s1849_s2  ;;  %s1853_s7 = sadd.s32 4294967295, %s1660_s11  }
  0x34   : > { %2365 = sst [smem:[#allocation29_spill]] %s1853_s7  ;;  %s1074_s17 = sadd.s32 4294967294, %s1660_s11  }
  0x35   : > { %s42_s14 = sadd.s32 1, %s1652_s9  ;;  %p62_p1 = scmp.ne.s32.totalorder %s1632_s29, %s1628_s28 }
  0x36   : > { %s312_s12 = scalar_lea.hbm %s2362_s3, %s1095_s6  ;;  %s39_s6 = sadd.s32 1, %s1648_s8 }
  0x37   : > { %s313_s30 = sshll.u32 %s312_s12, 4  ;;  %p40_p13 = scmp.ge.s32.totalorder %s39_s6, 2  ;;  %s314_s30 = int_to_ptr.hbm [resolvable:$true] %s313_s30 }
  0x38   : > { %1136 = dma.hbm_to_vmem [thread:$0]  (!%p1134_p12), %s314_s30, 4096, %s316_s4, %s1849_s2, %s1664_s18, %s1664_s18, %s1665_s15  }
  0x39   : > { %s46_s12 = sadd.s32 1, %s1656_s10  ;;  %s2433_s6 = smov (%p40_p13, %s39_s6), 0 }
  0x3a   : > { %2366 = sst [smem:[#allocation30_spill]] %s2433_s6  ;;  %s2435_s14 = smov (!%p40_p13, %s42_s14), %s1652_s9 }
  0x3b   : > { %p1870_p4 = por %p2323_p0, %p62_p1  ;;  %p68_p6 = scmp.ne.s32.totalorder %s1628_s28, %s1624_s27 }
  0x3c   : > { %p44_p7 = scmp.ge.s32.totalorder %s2435_s14, 2  ;;  %p69_p9 = scmp.eq.s32.totalorder %s1853_s7, 0 }
  0x3d   : > { %s139_s4 = ssub.s32 %s1648_s8, %s2433_s6  ;;  %p208_p11 = scmp.eq.s32.totalorder %s1853_s7, 7 }
  0x3e   : > { %s2437_s14 = smov (%p44_p7, %s2435_s14), 0  ;;  %s2439_s12 = smov (!%p44_p7, %s46_s12), %s1656_s10 }
  0x3f   : > { %2368 = sst [smem:[#allocation31_spill]] %s2437_s14  ;;  %s51_s18 = ssub.s32 %s1652_s9, %s2437_s14 }
  0x40   : > { %p1890_p12 = por %p69_p9, %p68_p6  ;;  %p48_p13 = scmp.ge.s32.totalorder %s2439_s12, 2 }
  0x41   : > { %p1899_p0 = por %p98_p2, %p69_p9  ;;  %p1908_p7 = por %p156_p10, %p69_p9 }
  0x42   : > { %s2369_s15 = scalar_select %p1890_p12, 1, 0 }
  0x43   : > { %s2371_s1 = scalar_select %p1899_p0, 1, 0 }
  0x44   : > { %2370 = sst [smem:[#allocation32_spill]] %s2369_s15  ;;  %p1915_p3 = por %p208_p11, %p62_p1 }
  0x45   : > { %2372 = sst [smem:[#allocation33_spill]] %s2371_s1  ;;  %s2441_s12 = smov (%p48_p13, %s2439_s12), 0 }
  0x46   : > { %s2373_s3 = scalar_select %p1908_p7, 1, 0 }
  0x47   : > { %s2375_s14 = scalar_select %p1915_p3, 1, 0 }
  0x48   : > { %2374 = sst [smem:[#allocation34_spill]] %s2373_s3  ;;  %p1921_p2 = scmp.eq.s32.totalorder %s1074_s17, 7 }
  0x49   : > { %2376 = sst [smem:[#allocation35_spill]] %s2375_s14  ;;  %s234_s21 = sand.u32 1, %s1632_s29  }
  0x4a   : > { %2377 = sst [smem:[#allocation36_spill]] %s2441_s12  ;;  %s1928_s8 = ssub.s32 %s1656_s10, %s2441_s12 }
  0x4b   : > { %s1076_s3 = sshll.u32 %s2441_s12, 1  ;;  %s52_s14 = sor.u32 %s51_s18, %s1928_s8 }
  0x4c   : > { %s81_s22 = sadd.s32 %s1076_s3, %s2433_s6  ;;  %p53_p10 = scmp.eq.s32.totalorder %s52_s14, 0 }
  0x4d   : > { %s82_s1 = ssub.s32 %s1795_s13, %s81_s22  ;;  %s140_s17 = sor.u32 %s139_s4, %s1928_s8 }
  0x4e   : > { %p83_p1 = scmp.eq.s32.totalorder %s82_s1, 0  ;;  %s2379_s25 = sadd.s32 1, %s1632_s29 }
  0x4f   : > { %s1938_s15 = scalar_select %p53_p10, %s1632_s29, %s2379_s25  }
  0x50   : > { %s2381_s2 = sadd.s32 1, %s1620_s26  ;;  %p141_p11 = scmp.eq.s32.totalorder %s140_s17, 0 }
  0x51   : > { %2380 = sst [smem:[#allocation37_spill]] %s1938_s15  ;;  %p1950_p13 = por %p1921_p2, %p68_p6 }
  0x52   : > { %s1943_s7 = scalar_select %p83_p1, %s1620_s26, %s2381_s2  }
  0x53   : > { %s1081_s3 = sshll.u32 %s234_s21, 4  ;;  %s2383_s22 = sadd.s32 1, %s1608_s23 }
  0x54   : > { %s1957_s14 = scalar_select %p141_p11, %s1608_s23, %s2383_s22  }
  0x55   : > { %s1082_s1 = sshll.u32 %s1652_s9, 1  ;;  %s1083_s4 = sshll.u32 %s1656_s10, 2 }
  0x56   : > { %s238_s18 = scalar_lea.vmem [#allocation3], %s1081_s3  ;;  %s243_s6 = sadd.s32 %s1083_s4, %s1082_s1 }
  0x57   : > { %s249_s25 = sshll.u32 %s238_s18, 4  ;;  %s1084_s2 = sshll.u32 %s243_s6, 3  ;;  %s250_s25 = int_to_ptr.vmem [resolvable:$true] %s249_s25 }
  0x58   : > { %p2384_p10 = scmp.lt.s32.totalorder %s1660_s11, 8  ;;  %s2385_s0 = sld [smem:[#allocation38_spill]] }
  0x59   : > { %s2386_s22 = sand.u32 1, %s1620_s26   ;;  %s2387_s3 = sld [smem:[#allocation18_spill]] }
  0x5a   : > { %p1125_p6 = pnand %p2384_p10, %p1870_p4  ;;  %s1089_s9 = sshll.u32 %s2386_s22, 2 }
  0x5b   : > { %s235_s6 = scalar_lea.sflag [#allocation4], %s234_s21  ;;  %s1091_s4 = sshll.u32 %s1795_s13, 2 }
  0x5c   : > { %s284_s18 = scalar_lea.vmem [#allocation8], %s1089_s9  ;;  %p167_p4 = scmp.eq.s32.totalorder %s1928_s8, 0 }
  0x5d   : > { %s294_s24 = sshll.u32 %s284_s18, 4  ;;  %s169_s21 = sadd.s32 1, %s1596_s20  ;;  %s295_s24 = int_to_ptr.vmem [resolvable:$true] %s294_s24 }
  0x5e   : > { %s245_s15 = scalar_lea.hbm %s2385_s0, %s1084_s2  ;;  %s2389_s0 = sld [smem:[#allocation40_spill]] }
  0x5f   : > { %s247_s1 = sshll.u32 %s245_s15, 4  ;;  %s2390_s15 = sld [smem:[#allocation28_spill]]  ;;  %s248_s1 = int_to_ptr.hbm [resolvable:$true] %s247_s1 }
  0x60   : > { %1127 = dma.hbm_to_vmem [thread:$0]  (!%p1125_p6), %s248_s1, 256, %s250_s25, %s235_s6  }
  0x61   : > { %p176_p2 = scmp.ne.s32.totalorder %s1596_s20, %s1592_s19  ;;  %p182_p1 = scmp.ne.s32.totalorder %s1592_s19, %s2387_s3 }
  0x62   : > { %s1984_s25 = scalar_select %p167_p4, %s1596_s20, %s169_s21  }
  0x63   : > { %p2391_p11 = scmp.eq.s32.totalorder %s1660_s11, 0  ;;  %p1990_p6 = por %p182_p1, %p69_p9 }
  0x64   : > { %s290_s29 = scalar_lea.hbm %s2389_s0, %s1091_s4  ;;  %s327_s0 = sand.u32 1, %s1596_s20  }
  0x65   : > { %s292_s22 = sshll.u32 %s290_s29, 4  ;;  %p178_p10 = por %p176_p2, %p2391_p11  ;;  %s293_s22 = int_to_ptr.hbm [resolvable:$true] %s292_s22 }
  0x66   : > { %1133 = dma.hbm_to_vmem [thread:$0]  (!%p1815_p5), %s293_s22, 64, %s295_s24, %s1823_s5  }
  0x67   : > { %s2393_s16 = sld [smem:[#allocation42_spill]]  ;;  %s328_s8 = scalar_lea.vmem [#allocation11], %s327_s0 }
  0x68   : > { %s335_s6 = sshll.u32 %s328_s8, 4  ;;  %p2394_p5 = scmp.lt.s32.totalorder %s1660_s11, 8  ;;  %s336_s6 = int_to_ptr.vmem [resolvable:$true] %s335_s6 }
  0x69   : > { %s2005_s4 = sand.u32 (!%p1828_p8), 1, %s1628_s28  }
  0x6a   : > { %p1137_p4 = pnand %p2394_p5, %p178_p10  ;;  %s1097_s18 = sshll.u32 (!%p1828_p8), %s2005_s4, 4 }
  0x6b   : > { %344 = sbr.rel (%p1828_p8) target bundleno = 521 (0x209), region = 40  ;;  %s347_s24 = scalar_lea.sflag (!%p1828_p8), [#allocation4], %s2005_s4 }
  0x6c   : > { %s2009_s17 = scalar_lea.vmem (!%p1828_p8), [#allocation3], %s1097_s18 }
  0x6d   : > { %s331_s1 = scalar_lea.hbm %s2393_s16, %s1656_s10 }
  0x6e   : > { %s333_s5 = sshll.u32 %s331_s1, 4  ;;  %s334_s5 = int_to_ptr.hbm [resolvable:$true] %s333_s5 }
  0x6f   : > { %1139 = dma.hbm_to_vmem [thread:$0]  (!%p1137_p4), %s334_s5, 16, %s336_s6, %s2390_s15  }
  0x70   : > { %1567 = dma.done.wait (%p1890_p12), %s347_s24, 256  }
  0x71   : > { %1569 = vsyncadd (%p1890_p12), %s347_s24, 4294967040  ;;  %s2397_s2 = sld [smem:[#allocation29_spill]] }
  0x72   : > { %s2398_s22 = sld [smem:[#allocation20_spill]] }
  0x77   : > { %s356_s21 = sand.u32 1, %s2397_s2  }
  0x78   : > { %s358_s0 = sand.u32 1, %s2398_s22   ;;  %s357_s13 = scalar_lea.sflag [#allocation7], %s356_s21 }
  0x79   : > { %s1098_s29 = sshll.u32 %s358_s0, 10 }
  0x7a   : > { %s2017_s16 = scalar_lea.vmem [#allocation6], %s1098_s29 }
  0x7b   : > { %1571 = dma.done.wait (%p1899_p0), %s357_s13, 16448  }
  0x7c   : > { %1573 = vsyncadd (%p1899_p0), %s357_s13, 4294950848  ;;  %s2400_s1 = sld [smem:[#allocation19_spill]]  ;;  %s2023_s8 = sshll.u32 %s358_s0, 2 }
  0x7d   : > { %s370_s30 = scalar_lea.vmem [#allocation8], %s2023_s8  ;;  %s377_s18 = scalar_lea.sflag [#allocation10], %s356_s21 }
  0x82   : > { %s378_s6 = sand.u32 1, %s2400_s1  }
  0x83   : > { %s1100_s3 = sshll.u32 %s378_s6, 8 }
  0x84   : > { %s2027_s24 = scalar_lea.vmem [#allocation9], %s1100_s3 }
  0x85   : > { %1575 = dma.done.wait (%p1908_p7), %s377_s18, 4096  }
  0x86   : > { %1577 = vsyncadd (%p1908_p7), %s377_s18, 4294963200  ;;  %s388_s2 = sand.u32 1, %s1592_s19  }
  0x87   : > { %s2034_s22 = scalar_lea.vmem [#allocation11], %s388_s2 }
  0x88   : > { %1579 = dma.done.wait (%p1990_p6), %s377_s18, 16  }
  0x89   : > { %1581 = vsyncadd (%p1990_p6), %s377_s18, 4294967280  ;;  %s1101_s15 = sshll.u32 %s2005_s4, 3  ;;  %s2402_s0 = sld [smem:[#allocation22_spill]] }
  0x8a   : > { %s2041_s21 = scalar_lea.vmem [#allocation12], %s1101_s15 }
  0x8f   : > { %p1102_p0 = scmp.ne.s32.totalorder %s2402_s0, 0 }
  0x91   : > { %444 = sbr.rel (%p1102_p0) target bundleno = 152 (0x98), region = 64 }
  0x96   : > { %v1666_v0 = vmov 0.0  }
  0x97   : > { %445 = vst [vmem:[#allocation2] sm:$0xff] %v1666_v0 }
  0x98 PF: > { %v508_v1 = vld [vmem:[%s2017_s16 + $0x1e0] sm:$0xff]  ;;  %v509_v2 = vld [vmem:[%s2017_s16 + $0x1e8] sm:$0xff]  ;;  %v510_v0 = vld [vmem:[%s2017_s16 + $0x1f0] sm:$0xff]  ;;  %s2403_s9 = sld [smem:[#allocation22_spill]] }
  0x99   : > { %v504_v3 = vld [vmem:[%s2017_s16 + $0x1c0] sm:$0xff]  ;;  %586 = vmatpush.msra.mxu0 %v508_v1  ;;  %626 = vmatpush.msra.mxu2 %v509_v2  ;;  %v505_v5 = vld [vmem:[%s2017_s16 + $0x1c8] sm:$0xff]  ;;  %v511_v1 = vld [vmem:[%s2017_s16 + $0x1f8] sm:$0xff] }
  0x9a   : > { %v572_v4 = vld [vmem:[%s2017_s16 + $0x3e0] sm:$0xff]  ;;  %v573_v6 = vld [vmem:[%s2017_s16 + $0x3e8] sm:$0xff] }
  0x9b   : > { %606 = vmatpush.msra.mxu1 %v572_v4  ;;  %646 = vmatpush.msra.mxu3 %v573_v6  ;;  %v500_v7 = vld [vmem:[%s2017_s16 + $0x1a0] sm:$0xff]  ;;  %v501_v9 = vld [vmem:[%s2017_s16 + $0x1a8] sm:$0xff]  ;;  %v574_v6 = vld [vmem:[%s2017_s16 + $0x3f0] sm:$0xff] }
  0x9c   : > { %v568_v8 = vld [vmem:[%s2017_s16 + $0x3c0] sm:$0xff]  ;;  %587 = vmatpush.msra.mxu0 %v504_v3  ;;  %627 = vmatpush.msra.mxu2 %v505_v5  ;;  %v569_v10 = vld [vmem:[%s2017_s16 + $0x3c8] sm:$0xff]  ;;  %v506_v5 = vld [vmem:[%s2017_s16 + $0x1d0] sm:$0xff] }
  0x9d   : > { %v564_v11 = vld [vmem:[%s2017_s16 + $0x3a0] sm:$0xff]  ;;  %607 = vmatpush.msra.mxu1 %v568_v8  ;;  %647 = vmatpush.msra.mxu3 %v569_v10  ;;  %v497_v13 = vld [vmem:[%s2017_s16 + $0x188] sm:$0xff]  ;;  %v575_v8 = vld [vmem:[%s2017_s16 + $0x3f8] sm:$0xff] }
  0x9e   : > { %v496_v12 = vld [vmem:[%s2017_s16 + $0x180] sm:$0xff]  ;;  %v565_v14 = vld [vmem:[%s2017_s16 + $0x3a8] sm:$0xff]  ;;  %588 = vmatpush.msra.mxu0 %v500_v7  ;;  %628 = vmatpush.msra.mxu2 %v501_v9  ;;  %v507_v7 = vld [vmem:[%s2017_s16 + $0x1d8] sm:$0xff]  ;;  %p1105_p8 = scmp.ne.s32.totalorder %s2403_s9, 1 }
  0x9f   : > { %v560_v15 = vld [vmem:[%s2017_s16 + $0x380] sm:$0xff]  ;;  %v561_v16 = vld [vmem:[%s2017_s16 + $0x388] sm:$0xff]  ;;  %608 = vmatpush.msra.mxu1 %v564_v11  ;;  %648 = vmatpush.msra.mxu3 %v565_v14  ;;  %v502_v9 = vld [vmem:[%s2017_s16 + $0x1b0] sm:$0xff] }
  0xa0   : > { %v492_v17 = vld [vmem:[%s2017_s16 + $0x160] sm:$0xff]  ;;  %v493_v18 = vld [vmem:[%s2017_s16 + $0x168] sm:$0xff]  ;;  %589 = vmatpush.msra.mxu0 %v496_v12  ;;  %629 = vmatpush.msra.mxu2 %v497_v13  ;;  %v570_v10 = vld [vmem:[%s2017_s16 + $0x3d0] sm:$0xff] }
  0xa1   : > { %v556_v19 = vld [vmem:[%s2017_s16 + $0x360] sm:$0xff]  ;;  %v557_v20 = vld [vmem:[%s2017_s16 + $0x368] sm:$0xff]  ;;  %609 = vmatpush.msra.mxu1 %v560_v15  ;;  %649 = vmatpush.msra.mxu3 %v561_v16  ;;  %v503_v11 = vld [vmem:[%s2017_s16 + $0x1b8] sm:$0xff] }
  0xa2   : > { %v488_v21 = vld [vmem:[%s2017_s16 + $0x140] sm:$0xff]  ;;  %v489_v22 = vld [vmem:[%s2017_s16 + $0x148] sm:$0xff]  ;;  %590 = vmatpush.msra.mxu0 %v492_v17  ;;  %630 = vmatpush.msra.mxu2 %v493_v18  ;;  %v571_v12 = vld [vmem:[%s2017_s16 + $0x3d8] sm:$0xff] }
  0xa3   : > { %v552_v23 = vld [vmem:[%s2017_s16 + $0x340] sm:$0xff]  ;;  %v553_v24 = vld [vmem:[%s2017_s16 + $0x348] sm:$0xff]  ;;  %610 = vmatpush.msra.mxu1 %v556_v19  ;;  %650 = vmatpush.msra.mxu3 %v557_v20  ;;  %v498_v13 = vld [vmem:[%s2017_s16 + $0x190] sm:$0xff] }
  0xa4   : > { %v484_v25 = vld [vmem:[%s2017_s16 + $0x120] sm:$0xff]  ;;  %v485_v26 = vld [vmem:[%s2017_s16 + $0x128] sm:$0xff]  ;;  %591 = vmatpush.msra.mxu0 %v488_v21  ;;  %631 = vmatpush.msra.mxu2 %v489_v22  ;;  %v566_v14 = vld [vmem:[%s2017_s16 + $0x3b0] sm:$0xff] }
  0xa5   : > { %v548_v27 = vld [vmem:[%s2017_s16 + $0x320] sm:$0xff]  ;;  %v549_v28 = vld [vmem:[%s2017_s16 + $0x328] sm:$0xff]  ;;  %611 = vmatpush.msra.mxu1 %v552_v23  ;;  %651 = vmatpush.msra.mxu3 %v553_v24  ;;  %v499_v15 = vld [vmem:[%s2017_s16 + $0x198] sm:$0xff] }
  0xa6   : > { %v480_v29 = vld [vmem:[%s2017_s16 + $0x100] sm:$0xff]  ;;  %v481_v30 = vld [vmem:[%s2017_s16 + $0x108] sm:$0xff]  ;;  %592 = vmatpush.msra.mxu0 %v484_v25  ;;  %632 = vmatpush.msra.mxu2 %v485_v26  ;;  %v567_v16 = vld [vmem:[%s2017_s16 + $0x3b8] sm:$0xff] }
  0xa7   : > { %v544_v31 = vld [vmem:[%s2017_s16 + $0x300] sm:$0xff]  ;;  %v545_v32 = vld [vmem:[%s2017_s16 + $0x308] sm:$0xff]  ;;  %612 = vmatpush.msra.mxu1 %v548_v27  ;;  %652 = vmatpush.msra.mxu3 %v549_v28  ;;  %v494_v17 = vld [vmem:[%s2017_s16 + $0x170] sm:$0xff] }
  0xa8   : > { %v476_v33 = vld [vmem:[%s2017_s16 + $0xe0] sm:$0xff]  ;;  %v477_v34 = vld [vmem:[%s2017_s16 + $0xe8] sm:$0xff]  ;;  %593 = vmatpush.msra.mxu0 %v480_v29  ;;  %633 = vmatpush.msra.mxu2 %v481_v30  ;;  %v562_v18 = vld [vmem:[%s2017_s16 + $0x390] sm:$0xff] }
  0xa9   : > { %v540_v35 = vld [vmem:[%s2017_s16 + $0x2e0] sm:$0xff]  ;;  %v541_v36 = vld [vmem:[%s2017_s16 + $0x2e8] sm:$0xff]  ;;  %613 = vmatpush.msra.mxu1 %v544_v31  ;;  %653 = vmatpush.msra.mxu3 %v545_v32  ;;  %v495_v19 = vld [vmem:[%s2017_s16 + $0x178] sm:$0xff] }
  0xaa   : > { %v472_v37 = vld [vmem:[%s2017_s16 + $0xc0] sm:$0xff]  ;;  %v473_v38 = vld [vmem:[%s2017_s16 + $0xc8] sm:$0xff]  ;;  %594 = vmatpush.msra.mxu0 %v476_v33  ;;  %634 = vmatpush.msra.mxu2 %v477_v34  ;;  %v563_v20 = vld [vmem:[%s2017_s16 + $0x398] sm:$0xff] }
  0xab   : > { %v536_v39 = vld [vmem:[%s2017_s16 + $0x2c0] sm:$0xff]  ;;  %v537_v40 = vld [vmem:[%s2017_s16 + $0x2c8] sm:$0xff]  ;;  %614 = vmatpush.msra.mxu1 %v540_v35  ;;  %654 = vmatpush.msra.mxu3 %v541_v36  ;;  %v490_v21 = vld [vmem:[%s2017_s16 + $0x150] sm:$0xff] }
  0xac   : > { %v468_v41 = vld [vmem:[%s2017_s16 + $0xa0] sm:$0xff]  ;;  %v469_v42 = vld [vmem:[%s2017_s16 + $0xa8] sm:$0xff]  ;;  %595 = vmatpush.msra.mxu0 %v472_v37  ;;  %635 = vmatpush.msra.mxu2 %v473_v38  ;;  %v558_v22 = vld [vmem:[%s2017_s16 + $0x370] sm:$0xff] }
  0xad   : > { %v532_v43 = vld [vmem:[%s2017_s16 + $0x2a0] sm:$0xff]  ;;  %v533_v44 = vld [vmem:[%s2017_s16 + $0x2a8] sm:$0xff]  ;;  %615 = vmatpush.msra.mxu1 %v536_v39  ;;  %655 = vmatpush.msra.mxu3 %v537_v40  ;;  %v491_v23 = vld [vmem:[%s2017_s16 + $0x158] sm:$0xff] }
  0xae   : > { %v464_v45 = vld [vmem:[%s2017_s16 + $0x80] sm:$0xff]  ;;  %v465_v46 = vld [vmem:[%s2017_s16 + $0x88] sm:$0xff]  ;;  %596 = vmatpush.msra.mxu0 %v468_v41  ;;  %636 = vmatpush.msra.mxu2 %v469_v42  ;;  %v559_v24 = vld [vmem:[%s2017_s16 + $0x378] sm:$0xff] }
  0xaf   : > { %v528_v47 = vld [vmem:[%s2017_s16 + $0x280] sm:$0xff]  ;;  %v529_v48 = vld [vmem:[%s2017_s16 + $0x288] sm:$0xff]  ;;  %616 = vmatpush.msra.mxu1 %v532_v43  ;;  %656 = vmatpush.msra.mxu3 %v533_v44  ;;  %v486_v25 = vld [vmem:[%s2017_s16 + $0x130] sm:$0xff] }
  0xb0   : > { %v460_v49 = vld [vmem:[%s2017_s16 + $0x60] sm:$0xff]  ;;  %v461_v50 = vld [vmem:[%s2017_s16 + $0x68] sm:$0xff]  ;;  %597 = vmatpush.msra.mxu0 %v464_v45  ;;  %637 = vmatpush.msra.mxu2 %v465_v46  ;;  %v554_v26 = vld [vmem:[%s2017_s16 + $0x350] sm:$0xff] }
  0xb1   : > { %v524_v51 = vld [vmem:[%s2017_s16 + $0x260] sm:$0xff]  ;;  %v525_v52 = vld [vmem:[%s2017_s16 + $0x268] sm:$0xff]  ;;  %617 = vmatpush.msra.mxu1 %v528_v47  ;;  %657 = vmatpush.msra.mxu3 %v529_v48  ;;  %v487_v27 = vld [vmem:[%s2017_s16 + $0x138] sm:$0xff] }
  0xb2   : > { %v456_v53 = vld [vmem:[%s2017_s16 + $0x40] sm:$0xff]  ;;  %v457_v54 = vld [vmem:[%s2017_s16 + $0x48] sm:$0xff]  ;;  %598 = vmatpush.msra.mxu0 %v460_v49  ;;  %638 = vmatpush.msra.mxu2 %v461_v50  ;;  %v555_v28 = vld [vmem:[%s2017_s16 + $0x358] sm:$0xff] }
  0xb3   : > { %v520_v55 = vld [vmem:[%s2017_s16 + $0x240] sm:$0xff]  ;;  %v521_v56 = vld [vmem:[%s2017_s16 + $0x248] sm:$0xff]  ;;  %618 = vmatpush.msra.mxu1 %v524_v51  ;;  %658 = vmatpush.msra.mxu3 %v525_v52  ;;  %v482_v29 = vld [vmem:[%s2017_s16 + $0x110] sm:$0xff] }
  0xb4   : > { %v452_v57 = vld [vmem:[%s2017_s16 + $0x20] sm:$0xff]  ;;  %v453_v58 = vld [vmem:[%s2017_s16 + $0x28] sm:$0xff]  ;;  %599 = vmatpush.msra.mxu0 %v456_v53  ;;  %639 = vmatpush.msra.mxu2 %v457_v54  ;;  %v550_v30 = vld [vmem:[%s2017_s16 + $0x330] sm:$0xff] }
  0xb5   : > { %v516_v59 = vld [vmem:[%s2017_s16 + $0x220] sm:$0xff]  ;;  %v517_v60 = vld [vmem:[%s2017_s16 + $0x228] sm:$0xff]  ;;  %619 = vmatpush.msra.mxu1 %v520_v55  ;;  %659 = vmatpush.msra.mxu3 %v521_v56  ;;  %v483_v31 = vld [vmem:[%s2017_s16 + $0x118] sm:$0xff] }
  0xb6   : > { %v448_v61 = vld [vmem:[%s2017_s16] sm:$0xff]  ;;  %v449_v62 = vld [vmem:[%s2017_s16 + $0x8] sm:$0xff]  ;;  %600 = vmatpush.msra.mxu0 %v452_v57  ;;  %640 = vmatpush.msra.mxu2 %v453_v58  ;;  %v551_v32 = vld [vmem:[%s2017_s16 + $0x338] sm:$0xff] }
  0xb7   : > { %v2107_v63 = vld [vmem:[%s2009_s17] sm:$0xff]  ;;  %620 = vmatpush.msra.mxu1 %v516_v59  ;;  %660 = vmatpush.msra.mxu3 %v517_v60  ;;  %v513_v3 = vld [vmem:[%s2017_s16 + $0x208] sm:$0xff]  ;;  %v479_v35 = vld [vmem:[%s2017_s16 + $0xf8] sm:$0xff] }
  0xb8   : > { %601 = vmatpush.msra.mxu0 %v448_v61  ;;  %641 = vmatpush.msra.mxu2 %v449_v62  ;;  %v512_v2 = vld [vmem:[%s2017_s16 + $0x200] sm:$0xff]  ;;  %v2116_v4 = vld [vmem:[%s2009_s17 + $0x8] sm:$0xff]  ;;  %v478_v33 = vld [vmem:[%s2017_s16 + $0xf0] sm:$0xff] }
  0xb9   : > { %602 = vmatmul.f32.vlgmr.msra.gmra.mxu0 %v2107_v63  ;;  %642 = vmatmul.f32.vlgmr.msra.gmra.mxu2 %v2107_v63  ;;  %v546_v34 = vld [vmem:[%s2017_s16 + $0x310] sm:$0xff]  ;;  %v547_v36 = vld [vmem:[%s2017_s16 + $0x318] sm:$0xff] }
  0xba   : > { %666 = vmatpush.msrb.mxu0 %v510_v0  ;;  %706 = vmatpush.msrb.mxu2 %v511_v1  ;;  %v474_v37 = vld [vmem:[%s2017_s16 + $0xd0] sm:$0xff]  ;;  %v475_v39 = vld [vmem:[%s2017_s16 + $0xd8] sm:$0xff] }
  0xbb   : > { %621 = vmatpush.msra.mxu1 %v512_v2  ;;  %661 = vmatpush.msra.mxu3 %v513_v3  ;;  %v542_v38 = vld [vmem:[%s2017_s16 + $0x2f0] sm:$0xff]  ;;  %v543_v40 = vld [vmem:[%s2017_s16 + $0x2f8] sm:$0xff] }
  0xbc   : > { %622 = vmatmul.f32.vlgmr.msra.gmra.mxu1 %v2116_v4  ;;  %662 = vmatmul.f32.vlgmr.msra.gmra.mxu3 %v2116_v4  ;;  %v470_v41 = vld [vmem:[%s2017_s16 + $0xb0] sm:$0xff]  ;;  %v471_v43 = vld [vmem:[%s2017_s16 + $0xb8] sm:$0xff] }
  0xbd   : > { %667 = vmatpush.msrb.mxu0 %v506_v5  ;;  %686 = vmatpush.msrb.mxu1 %v574_v6  ;;  %v538_v42 = vld [vmem:[%s2017_s16 + $0x2d0] sm:$0xff]  ;;  %v539_v44 = vld [vmem:[%s2017_s16 + $0x2d8] sm:$0xff]  ;;  %v804_v5 = vld [vmem:[%s2027_s24 + $0x78] sm:$0xff] }
  0xbe   : > { %707 = vmatpush.msrb.mxu2 %v507_v7  ;;  %726 = vmatpush.msrb.mxu3 %v575_v8  ;;  %v466_v45 = vld [vmem:[%s2017_s16 + $0x90] sm:$0xff]  ;;  %v467_v47 = vld [vmem:[%s2017_s16 + $0x98] sm:$0xff]  ;;  %v801_v8 = vld [vmem:[%s2027_s24 + $0x60] sm:$0xff] }
  0xbf   : > { %668 = vmatpush.msrb.mxu0 %v502_v9  ;;  %687 = vmatpush.msrb.mxu1 %v570_v10  ;;  %v534_v46 = vld [vmem:[%s2017_s16 + $0x2b0] sm:$0xff]  ;;  %v535_v48 = vld [vmem:[%s2017_s16 + $0x2b8] sm:$0xff]  ;;  %v800_v9 = vld [vmem:[%s2027_s24 + $0x58] sm:$0xff] }
  0xc0   : > { %708 = vmatpush.msrb.mxu2 %v503_v11  ;;  %727 = vmatpush.msrb.mxu3 %v571_v12  ;;  %v462_v49 = vld [vmem:[%s2017_s16 + $0x70] sm:$0xff]  ;;  %v463_v51 = vld [vmem:[%s2017_s16 + $0x78] sm:$0xff] }
  0xc1   : > { %669 = vmatpush.msrb.mxu0 %v498_v13  ;;  %688 = vmatpush.msrb.mxu1 %v566_v14  ;;  %v530_v50 = vld [vmem:[%s2017_s16 + $0x290] sm:$0xff]  ;;  %v531_v52 = vld [vmem:[%s2017_s16 + $0x298] sm:$0xff]  ;;  %v817_v13 = vld [vmem:[%s2027_s24 + $0xe0] sm:$0xff] }
  0xc2   : > { %709 = vmatpush.msrb.mxu2 %v499_v15  ;;  %728 = vmatpush.msrb.mxu3 %v567_v16  ;;  %v458_v53 = vld [vmem:[%s2017_s16 + $0x50] sm:$0xff]  ;;  %v459_v55 = vld [vmem:[%s2017_s16 + $0x58] sm:$0xff]  ;;  %v797_v14 = vld [vmem:[%s2027_s24 + $0x40] sm:$0xff] }
  0xc3   : > { %670 = vmatpush.msrb.mxu0 %v494_v17  ;;  %689 = vmatpush.msrb.mxu1 %v562_v18  ;;  %v526_v54 = vld [vmem:[%s2017_s16 + $0x270] sm:$0xff]  ;;  %v527_v56 = vld [vmem:[%s2017_s16 + $0x278] sm:$0xff]  ;;  %v816_v15 = vld [vmem:[%s2027_s24 + $0xd8] sm:$0xff] }
  0xc4   : > { %710 = vmatpush.msrb.mxu2 %v495_v19  ;;  %729 = vmatpush.msrb.mxu3 %v563_v20  ;;  %v454_v57 = vld [vmem:[%s2017_s16 + $0x30] sm:$0xff]  ;;  %v455_v59 = vld [vmem:[%s2017_s16 + $0x38] sm:$0xff]  ;;  %v796_v16 = vld [vmem:[%s2027_s24 + $0x38] sm:$0xff] }
  0xc5   : > { %671 = vmatpush.msrb.mxu0 %v490_v21  ;;  %690 = vmatpush.msrb.mxu1 %v558_v22  ;;  %v522_v58 = vld [vmem:[%s2017_s16 + $0x250] sm:$0xff]  ;;  %v523_v60 = vld [vmem:[%s2017_s16 + $0x258] sm:$0xff]  ;;  %v2203_v18 = vld [vmem:[%s370_s30] sm:$0xf] }
  0xc6   : > { %711 = vmatpush.msrb.mxu2 %v491_v23  ;;  %730 = vmatpush.msrb.mxu3 %v559_v24  ;;  %v450_v61 = vld [vmem:[%s2017_s16 + $0x10] sm:$0xff]  ;;  %v451_v0 = vld [vmem:[%s2017_s16 + $0x18] sm:$0xff]  ;;  %v578_v21 = vperm.slane %v2203_v18, 0  ;;  %v813_v23 = vld [vmem:[%s2027_s24 + $0xc0] sm:$0xff] }
  0xc7   : > { %672 = vmatpush.msrb.mxu0 %v486_v25  ;;  %691 = vmatpush.msrb.mxu1 %v554_v26  ;;  %v518_v62 = vld [vmem:[%s2017_s16 + $0x230] sm:$0xff]  ;;  %v519_v1 = vld [vmem:[%s2017_s16 + $0x238] sm:$0xff]  ;;  %v793_v24 = vld [vmem:[%s2027_s24 + $0x20] sm:$0xff] }
  0xc8   : > { %712 = vmatpush.msrb.mxu2 %v487_v27  ;;  %731 = vmatpush.msrb.mxu3 %v555_v28  ;;  %v514_v2 = vld [vmem:[%s2017_s16 + $0x210] sm:$0xff]  ;;  %v515_v3 = vld [vmem:[%s2017_s16 + $0x218] sm:$0xff]  ;;  %v812_v25 = vld [vmem:[%s2027_s24 + $0xb8] sm:$0xff] }
  0xc9   : > { %673 = vmatpush.msrb.mxu0 %v482_v29  ;;  %692 = vmatpush.msrb.mxu1 %v550_v30  ;;  %v803_v6 = vld [vmem:[%s2027_s24 + $0x70] sm:$0xff]  ;;  %v802_v7 = vld [vmem:[%s2027_s24 + $0x68] sm:$0xff]  ;;  %v792_v28 = vld [vmem:[%s2027_s24 + $0x18] sm:$0xff] }
  0xca   : > { %713 = vmatpush.msrb.mxu2 %v483_v31  ;;  %732 = vmatpush.msrb.mxu3 %v551_v32  ;;  %v819_v10 = vld [vmem:[%s2027_s24 + $0xf0] sm:$0xff]  ;;  %v818_v11 = vld [vmem:[%s2027_s24 + $0xe8] sm:$0xff]  ;;  %v579_v31 = vperm.slane %v2203_v18, 1 }
  0xcb   : > { %674 = vmatpush.msrb.mxu0 %v478_v33  ;;  %693 = vmatpush.msrb.mxu1 %v546_v34  ;;  %v798_v12 = vld [vmem:[%s2027_s24 + $0x48] sm:$0xff]  ;;  %v815_v17 = vld [vmem:[%s2027_s24 + $0xd0] sm:$0xff] }
  0xcc   : > { %714 = vmatpush.msrb.mxu2 %v479_v35  ;;  %733 = vmatpush.msrb.mxu3 %v547_v36  ;;  %v795_v19 = vld [vmem:[%s2027_s24 + $0x30] sm:$0xff]  ;;  %v814_v20 = vld [vmem:[%s2027_s24 + $0xc8] sm:$0xff]  ;;  %v809_v36 = vld [vmem:[%s2027_s24 + $0xa0] sm:$0xff] }
  0xcd   : > { %675 = vmatpush.msrb.mxu0 %v474_v37  ;;  %694 = vmatpush.msrb.mxu1 %v542_v38  ;;  %v794_v22 = vld [vmem:[%s2027_s24 + $0x28] sm:$0xff]  ;;  %v811_v29 = vld [vmem:[%s2027_s24 + $0xb0] sm:$0xff] }
  0xce   : > { %715 = vmatpush.msrb.mxu2 %v475_v39  ;;  %734 = vmatpush.msrb.mxu3 %v543_v40  ;;  %v791_v32 = vld [vmem:[%s2027_s24 + $0x10] sm:$0xff]  ;;  %v810_v33 = vld [vmem:[%s2027_s24 + $0xa8] sm:$0xff]  ;;  %v789_v40 = vld [vmem:[%s2027_s24] sm:$0xff] }
  0xcf   : > { %676 = vmatpush.msrb.mxu0 %v470_v41  ;;  %695 = vmatpush.msrb.mxu1 %v538_v42  ;;  %v790_v35 = vld [vmem:[%s2027_s24 + $0x8] sm:$0xff]  ;;  %v808_v41 = vld [vmem:[%s2027_s24 + $0x98] sm:$0xff] }
  0xd0   : > { %716 = vmatpush.msrb.mxu2 %v471_v43  ;;  %735 = vmatpush.msrb.mxu3 %v539_v44  ;;  %v807_v43 = vld [vmem:[%s2027_s24 + $0x90] sm:$0xff] }
  0xd1   : > { %677 = vmatpush.msrb.mxu0 %v466_v45  ;;  %696 = vmatpush.msrb.mxu1 %v534_v46  ;;  %v806_v45 = vld [vmem:[%s2027_s24 + $0x88] sm:$0xff] }
  0xd2   : > { %717 = vmatpush.msrb.mxu2 %v467_v47  ;;  %736 = vmatpush.msrb.mxu3 %v535_v48  ;;  %v805_v47 = vld [vmem:[%s2027_s24 + $0x80] sm:$0xff] }
  0xd3   : > { %678 = vmatpush.msrb.mxu0 %v462_v49  ;;  %697 = vmatpush.msrb.mxu1 %v530_v50 }
  0xd4   : > { %718 = vmatpush.msrb.mxu2 %v463_v51  ;;  %737 = vmatpush.msrb.mxu3 %v531_v52 }
  0xd5   : > { %679 = vmatpush.msrb.mxu0 %v458_v53  ;;  %698 = vmatpush.msrb.mxu1 %v526_v54 }
  0xd6   : > { %719 = vmatpush.msrb.mxu2 %v459_v55  ;;  %738 = vmatpush.msrb.mxu3 %v527_v56 }
  0xd7   : > { %680 = vmatpush.msrb.mxu0 %v454_v57  ;;  %699 = vmatpush.msrb.mxu1 %v522_v58 }
  0xd8   : > { %720 = vmatpush.msrb.mxu2 %v455_v59  ;;  %739 = vmatpush.msrb.mxu3 %v523_v60 }
  0xd9   : > { %681 = vmatpush.msrb.mxu0 %v450_v61  ;;  %700 = vmatpush.msrb.mxu1 %v518_v62  ;;  %v580_v62 = vperm.slane %v2203_v18, 2 }
  0xda   : > { %721 = vmatpush.msrb.mxu2 %v451_v0  ;;  %740 = vmatpush.msrb.mxu3 %v519_v1 }
  0xdb   : > { %682 = vmatmul.f32.vlgmr.msrb.gmra.mxu0 %v2107_v63  ;;  %722 = vmatmul.f32.vlgmr.msrb.gmra.mxu2 %v2107_v63  ;;  %v820_v63 = vld [vmem:[%s2027_s24 + $0xf8] sm:$0xff] }
  0xdc   : > { %701 = vmatpush.msrb.mxu1 %v514_v2  ;;  %741 = vmatpush.msrb.mxu3 %v515_v3 }
  0xdd   : > { %702 = vmatmul.f32.vlgmr.msrb.gmra.mxu1 %v2116_v4  ;;  %742 = vmatmul.f32.vlgmr.msrb.gmra.mxu3 %v2116_v4  ;;  %v799_v4 = vld [vmem:[%s2027_s24 + $0x50] sm:$0xff] }
  0xde   : > { %821 = vmatpush.msra.mxu0 %v804_v5  ;;  %841 = vmatpush.msra.mxu1 %v820_v63 }
  0xe0   : > { %822 = vmatpush.msra.mxu0 %v803_v6  ;;  %842 = vmatpush.msra.mxu1 %v819_v10 }
  0xe2   : > { %823 = vmatpush.msra.mxu0 %v802_v7  ;;  %843 = vmatpush.msra.mxu1 %v818_v11 }
  0xe4   : > { %824 = vmatpush.msra.mxu0 %v801_v8  ;;  %844 = vmatpush.msra.mxu1 %v817_v13 }
  0xe6   : > { %825 = vmatpush.msra.mxu0 %v800_v9  ;;  %845 = vmatpush.msra.mxu1 %v816_v15 }
  0xe8   : > { %826 = vmatpush.msra.mxu0 %v799_v4  ;;  %846 = vmatpush.msra.mxu1 %v815_v17 }
  0xea   : > { %827 = vmatpush.msra.mxu0 %v798_v12  ;;  %847 = vmatpush.msra.mxu1 %v814_v20  ;;  %v581_v12 = vperm.slane %v2203_v18, 3 }
  0xec   : > { %828 = vmatpush.msra.mxu0 %v797_v14  ;;  %848 = vmatpush.msra.mxu1 %v813_v23 }
  0xee   : > { %829 = vmatpush.msra.mxu0 %v796_v16  ;;  %849 = vmatpush.msra.mxu1 %v812_v25 }
  0xf0   : > { %830 = vmatpush.msra.mxu0 %v795_v19  ;;  %850 = vmatpush.msra.mxu1 %v811_v29 }
  0xf2   : > { %831 = vmatpush.msra.mxu0 %v794_v22  ;;  %851 = vmatpush.msra.mxu1 %v810_v33 }
  0xf4   : > { %832 = vmatpush.msra.mxu0 %v793_v24  ;;  %852 = vmatpush.msra.mxu1 %v809_v36  ;;  %v788_v24 = vld [vmem:[#allocation2] sm:$0xff] }
  0xf6   : > { %833 = vmatpush.msra.mxu0 %v792_v28  ;;  %853 = vmatpush.msra.mxu1 %v808_v41 }
  0xf8   : > { %834 = vmatpush.msra.mxu0 %v791_v32  ;;  %854 = vmatpush.msra.mxu1 %v807_v43 }
  0xfa   : > { %835 = vmatpush.msra.mxu0 %v790_v35  ;;  %855 = vmatpush.msra.mxu1 %v806_v45 }
  0xfc   : > { %836 = vmatpush.msra.mxu0 %v789_v40  ;;  %856 = vmatpush.msra.mxu1 %v805_v47 }
 0x136   : > { %v603_v26 = vpop.f32.mrf.mxu0 }
 0x137   : > { %v604_v27 = vadd.f32 %v603_v26, %v578_v21 }
 0x139   : > { %v623_v30 = vpop.f32.mrf.mxu1 }
 0x13a   : > { %v624_v34 = vadd.f32 %v623_v30, %v604_v27 }
 0x13c   : > { %v1103_v37 = vmul.f32 -1.442695, %v624_v34  ;;  %v643_v38 = vpop.f32.mrf.mxu2 }
 0x13d   : > { %v644_v39 = vadd.f32 %v643_v38, %v579_v31 }
 0x13e   : > { %1303 = vpow2.f32 %v1103_v37 }
 0x13f   : > { %v663_v42 = vpop.f32.mrf.mxu3 }
 0x140   : > { %v664_v44 = vadd.f32 %v663_v42, %v644_v39 }
 0x142   : > { %v1104_v46 = vmul.f32 -1.442695, %v664_v44 }
 0x144   : > { %v1304_v48 = vpop.eup %1303  ;;  %1305 = vpow2.f32 %v1104_v46 }
 0x145   : > { %v752_v49 = vadd.f32 1.0, %v1304_v48 }
 0x147   : > { %1307 = vrcp.f32 %v752_v49  ;;  %v765_v55 = vand.u32 2147483648, %v752_v49  ;;  %vm759_vm0 = vweird.f32 %v752_v49  ;;  %v763_v57 = vand.u32 2147483647, %v752_v49 }
 0x149   : > { %v766_v61 = vor.u32 1.1754944e-38, %v765_v55  ;;  %vm764_vm3 = vcmp.eq.f32.partialorder %v763_v57, 8.507059e+37 }
 0x14a   : > { %v1306_v50 = vpop.eup %1305 }
 0x14b   : > { %v753_v51 = vadd.f32 1.0, %v1306_v50 }
 0x14d   : > { %v1308_v52 = vpop.eup %1307  ;;  %1309 = vrcp.f32 %v753_v51  ;;  %v780_v3 = vand.u32 2147483648, %v753_v51  ;;  %v778_v6 = vand.u32 2147483647, %v753_v51  ;;  %vm774_vm5 = vweird.f32 %v753_v51 }
 0x14e   : > { %v755_v53 = vmul.f32 %v1308_v52, %v752_v49  ;;  %vm760_vm1 = vweird.f32 %v1308_v52 }
 0x14f   : > { %vm761_vm2 = vmor %vm759_vm0, %vm760_vm1  ;;  %v781_v4 = vor.u32 1.1754944e-38, %v780_v3  ;;  %vm779_vm7 = vcmp.eq.f32.partialorder %v778_v6, 8.507059e+37 }
 0x150   : > { %v756_v54 = vsub.f32 1.0, %v755_v53 }
 0x152   : > { %v757_v56 = vmul.f32 %v1308_v52, %v756_v54 }
 0x153   : > { %v1310_v58 = vpop.eup %1309 }
 0x154   : > { %v758_v59 = vadd.f32 %v1308_v52, %v757_v56  ;;  %v770_v60 = vmul.f32 %v1310_v58, %v753_v51  ;;  %vm775_vm4 = vweird.f32 %v1310_v58 }
 0x155   : > { %vm776_vm6 = vmor %vm774_vm5, %vm775_vm4 }
 0x156   : > { %v762_v0 = vsel %vm761_vm2, %v1308_v52, %v758_v59  ;;  %v771_v1 = vsub.f32 1.0, %v770_v60 }
 0x157   : > { %v767_v2 = vsel %vm764_vm3, %v766_v61, %v762_v0 }
 0x158   : > { %v772_v5 = vmul.f32 %v1310_v58, %v771_v1  ;;  %v683_v7 = vpop.f32.mrf.mxu0  ;;  %v784_v8 = vmul.f32 %v767_v2, %v624_v34 }
 0x159   : > { %v684_v63 = vadd.f32 %v683_v7, %v580_v62 }
 0x15a   : > { %v773_v9 = vadd.f32 %v1310_v58, %v772_v5  ;;  %v703_v10 = vpop.f32.mrf.mxu1 }
 0x15b   : > { %v704_v11 = vadd.f32 %v703_v10, %v684_v63 }
 0x15c   : > { %v777_v13 = vsel %vm776_vm6, %v1310_v58, %v773_v9 }
 0x15d   : > { %v782_v14 = vsel %vm779_vm7, %v781_v4, %v777_v13  ;;  %v786_v15 = vmul.f32 %v784_v8, %v704_v11 }
 0x15e   : > { %v723_v16 = vpop.f32.mrf.mxu2  ;;  %v785_v17 = vmul.f32 %v782_v14, %v664_v44 }
 0x15f   : > { %v724_v19 = vadd.f32 %v723_v16, %v581_v12  ;;  %837 = vmatmul.f32.vlgmr.msra.gmra.mxu0 %v786_v15 }
 0x160   : > { %v743_v20 = vpop.f32.mrf.mxu3 }
 0x161   : > { %v744_v21 = vadd.f32 %v743_v20, %v724_v19 }
 0x163   : > { %v787_v22 = vmul.f32 %v785_v17, %v744_v21 }
 0x165   : > { %857 = vmatmul.f32.vlgmr.msra.gmra.mxu1 %v787_v22 }
 0x1dc   : > { %v838_v23 = vpop.f32.mrf.mxu0 }
 0x1e2   : > { %v858_v25 = vpop.f32.mrf.mxu1 }
 0x1e3   : > { %v859_v26 = vadd.f32 %v858_v25, %v838_v23  ;;  %866 = sbr.rel (%p1105_p8) target bundleno = 498 (0x1f2), region = 68 }
 0x1e5   : > { %v861_v27 = vadd.f32 %v859_v26, %v788_v24 }
 0x1e7   : > { %862 = vst [vmem:[#allocation2] sm:$0xff] %v861_v27 }
 0x1e8   : > { %v1311_v28 = vld [vmem:[%s2034_s22] ss:$0 sm:$0xff] }
 0x1ee   : > { %v867_v18 = vld [vmem:[#allocation2] sm:$0xff] }
 0x1ef   : > { %v872_v29 = vadd.f32 %v1311_v28, %v867_v18 }
 0x1f1   : > { %873 = vst [vmem:[%s2041_s21] sm:$0xff] %v872_v29 }
 0x1f2 PF: > { %s2404_s17 = sld [smem:[#allocation24_spill]]  ;;  %s889_s5 = sshll.u32 %s2041_s21, 4  ;;  %s890_s5 = int_to_ptr.vmem [resolvable:$true] %s889_s5 }
 0x1f3   : > { %s2405_s29 = sld [smem:[#allocation23_spill]]  ;;  %s875_s22 = scalar_lea.sflag [#allocation5], %s2005_s4 }
 0x1f4   : > { %s2407_s30 = sld [smem:[#allocation43_spill]] }
 0x1f8   : > { %s1107_s16 = sshll.u32 %s2404_s17, 1 }
 0x1f9   : > { %s885_s1 = sadd.s32 %s2405_s29, %s1107_s16 }
 0x1fa   : > { %s1108_s8 = sshll.u32 %s885_s1, 3  ;;  %s2408_s2 = smov %s2407_s30 }
 0x1fb   : > { %s887_s18 = scalar_lea.hbm %s2407_s30, %s1108_s8  ;;  %s1482_s21 = scalar_lea.hbm %s2408_s2, 32 }
 0x1fc   : > { %s891_s24 = sshll.u32 %s887_s18, 4  ;;  %s892_s24 = int_to_ptr.hbm [resolvable:$true] %s891_s24 }
 0x1fd   : > { %s1476_s15 = sshra.s32 %s892_s24, 4  ;;  %s1477_s15 = int_to_ptr.hbm [resolvable:$true] %s1476_s15 }
 0x1fe   : > { %s1478_s0 = scalar_lea.hbm %s1477_s15, 8  ;;  %p1483_p2 = scmp.lt.s32.totalorder %s1477_s15, %s2408_s2 }
 0x1ff   : > { %p1479_p9 = scmp.ne.s32.totalorder %s1477_s15, %s1478_s0  ;;  %p1484_p1 = scmp.lt.s32.totalorder %s1482_s21, %s1478_s0 }
 0x201   : > { %p1480_p12 = pnand %p1479_p9, %p1915_p3  ;;  %p1485_p11 = por %p1484_p1, %p1483_p2 }
 0x203   : > { %p1481_p7 = pneg %p1480_p12 }
 0x205   : > { %p1486_p10 = pnand %p1485_p11, %p1481_p7 }
 0x207   : > { %1489 = shalt.err (!%p1486_p10)
}
 0x208   : > { %1122 = dma.vmem_to_hbm [thread:$0]  (%p1915_p3), %s890_s5, 128, %s892_s24, %s875_s22  }
 0x209 PF: > { %p1145_p6 = scmp.ge.s32.totalorder %s1660_s11, 2  ;;  %s903_s4 = sand.u32 1, %s1624_s27  }
 0x20a   : > { %s904_s1 = scalar_lea.sflag [#allocation5], %s903_s4 }
 0x20b   : > { %p1141_p5 = pnand %p1145_p6, %p1950_p13 }
 0x20d   : > { %p1142_p4 = pneg %p1141_p5 }
 0x20f   : > { %1583 = dma.done.wait (%p1142_p4), %s904_s1, 128  }
 0x210   : > { %1585 = vsyncadd (%p1142_p4), %s904_s1, 4294967168  ;;  %s27_s11 = sadd.s32 1, %s1660_s11   ;;  %s2410_s21 = sld [smem:[#allocation19_spill]] }
 0x211   : > { %p2251_p0 = scmp.ge.s32.totalorder %s27_s11, 10   ;;  %s2411_s24 = sld [smem:[#allocation20_spill]] }
 0x212   : > { %s2412_s12 = sld [smem:[#allocation21_spill]]  ;;  %s2417_s18 = smov %s1592_s19 }
 0x213   : > { %s2413_s29 = sld [smem:[#allocation37_spill]]  ;;  %s2419_s19 = smov %s1596_s20 }
 0x214   : > { %s2414_s30 = sld [smem:[#allocation25_spill]]  ;;  %s2421_s20 = smov %s1984_s25 }
 0x215   : > { %s2415_s6 = sld [smem:[#allocation26_spill]]  ;;  %s2423_s22 = smov %s1608_s23 }
 0x216   : > { %s2416_s13 = sld [smem:[#allocation30_spill]]  ;;  %s2424_s23 = smov %s1957_s14 }
 0x217   : > { %s2418_s9 = sld [smem:[#allocation31_spill]]  ;;  %s2425_s25 = smov %s1620_s26 }
 0x218   : > { %s2420_s5 = sld [smem:[#allocation36_spill]]  ;;  %s2426_s26 = smov %s1943_s7 }
 0x219   : > { %s2427_s27 = smov %s1628_s28  ;;  %s2428_s28 = smov %s2412_s12 }
 0x21a   : > { %s2429_s7 = smov %s1656_s10  ;;  %26 = sbr.rel (!%p2251_p0) target bundleno = 24 (0x18), region = 141 }
 0x21c   : > { %s2430_s8 = smov %s2416_s13 }
 0x21e   : > { %s2431_s10 = smov %s2420_s5 }
 0x21f   :  { %910 = vsyncpa [#allocation4], 1 }
 0x220   :  { %912 = vsyncpa [#allocation4 + $0x1], 1 }
 0x221   :  { %913 = vsyncpa [#allocation7], 1 }
 0x222   :  { %915 = vsyncpa [#allocation7 + $0x1], 1 }
 0x223   :  { %916 = vsyncpa [#allocation10], 1 }
 0x224   :  { %918 = vsyncpa [#allocation10 + $0x1], 1 }
 0x225   :  { %919 = vsyncpa [#allocation5], 1 }
 0x226   :  { %921 = vsyncpa [#allocation5 + $0x1], 1 }

</bundles_post_ra>
